<compile_context>
chip_gen: v7x
topology: tpu7x:2x2x1
jax: 0.10.0
libtpu: 0.0.40
codegen_flags: <defaults>
</compile_context>

<pallas_src>
import functools

import jax
import jax.numpy as jnp
from jax.experimental import pallas as pl
from jax.experimental.pallas import tpu as pltpu


def _ls_ce_partial_kernel(preds_ref, tgt_ref, out_ref, *, n_total):
    """Per-tile partial sums for label-smoothing cross entropy.

    preds_ref: (TM, C) input block (any float dtype), tgt_ref: (TM, 1) int32,
    out_ref:   (1, 1, 128) f32; lane 0 = sum(-sum(logp)), lane 1 = sum(nll).
    """
    x = preds_ref[...].astype(jnp.float32)                         # (TM, C)
    tm, c = x.shape

    # Mask rows of the (possibly padded) last tile.  Keep this a select (not a
    # multiply) so NaN/Inf from out-of-bounds padded rows cannot leak.
    row = jax.lax.broadcasted_iota(jnp.int32, (tm, 1), 0) + pl.program_id(0) * tm
    valid = row < n_total                                          # (TM, 1)

    # log-softmax pieces without materializing logp (saves a (TM, C) temp).
    m = jnp.max(x, axis=-1, keepdims=True)                         # (TM, 1)
    lse = m + jnp.log(jnp.sum(jnp.exp(x - m), axis=-1, keepdims=True))
    sum_x = jnp.sum(x, axis=-1, keepdims=True)                     # (TM, 1)

    # x[i, target[i]] via one-hot masked reduce (gather-free, VPU/XLU only;
    # deliberately NOT an MXU matmul).
    col = jax.lax.broadcasted_iota(jnp.int32, (tm, c), 1)          # (TM, C)
    x_tgt = jnp.sum(jnp.where(col == tgt_ref[...], x, 0.0),
                    axis=-1, keepdims=True)                        # (TM, 1)

    neg_sum_logp = c * lse - sum_x                                 # -sum_j logp[i, j]
    nll = lse - x_tgt                                              # -logp[i, target[i]]

    loss_part = jnp.sum(jnp.where(valid, neg_sum_logp, 0.0))       # scalar f32
    nll_part = jnp.sum(jnp.where(valid, nll, 0.0))                 # scalar f32

    lane = jax.lax.broadcasted_iota(jnp.int32, out_ref.shape, 2)   # (1, 1, 128)
    out_ref[...] = jnp.where(
        lane == 0, loss_part,
        jnp.where(lane == 1, nll_part, 0.0)).astype(jnp.float32)


def _round_up(v, m):
    return (v + m - 1) // m * m


def _vmem_limit_bytes():
    """~75% of this generation's per-core VMEM (fallback: v7x's 64 MiB)."""
    try:
        cap = int(pltpu.get_tpu_info().vmem_capacity_bytes)
    except Exception:
        cap = 64 * 1024 * 1024
    return max(32 * 1024 * 1024, min(int(cap * 0.75), 100 * 1024 * 1024))


def label_smoothing_cross_entropy(preds, target, *, epsilon=0.1,
                                  reduction='mean', block_rows=None):
    """preds: (N, C) float (f32 or bf16), target: (N,) int. Returns scalar f32."""
    assert preds.ndim == 2 and target.ndim == 1 and preds.shape[0] == target.shape[0]
    if reduction not in ('mean', 'sum'):
        raise NotImplementedError("reduction must be 'mean' or 'sum'")

    n, c = preds.shape
    tgt2d = target.astype(jnp.int32).reshape(n, 1)
    # NOTE: preds are NOT upcast here -- bf16 stays bf16 in HBM (halves the
    # streamed bytes); the kernel casts each tile to f32 inside VMEM.

    itemsize = jnp.dtype(preds.dtype).itemsize
    sublane = 16 if itemsize <= 2 else 8            # bf16 packs 16 rows / vreg
    vmem_limit = _vmem_limit_bytes()

    if block_rows is None:
        # Per pipeline stage the kernel holds: 2x the streamed block (double
        # buffering) + several full-tile f32/i32 temporaries (f32 cast, x-m,
        # exp temp, col iota, masked select) -> ~(2*itemsize + 20) B/element.
        bytes_per_elem = 2 * itemsize + 20
        budget = int(vmem_limit * 0.6)              # headroom for outputs/scratch
        tm = budget // max(1, c * bytes_per_elem)
        # Keep >= ~4 row tiles so both TensorCores share the 'parallel' axis
        # (v7x megacore) and the software pipeline has work to overlap.
        tm = min(tm, max(sublane, _round_up(pl.cdiv(n, 4), sublane)))
    else:
        tm = int(block_rows)

    # Defensive rounding: non-sublane-multiple tiles violate the (8,128)
    # BlockSpec constraint (or force half-packed bf16 sublanes).
    tm = max(sublane, _round_up(tm, sublane))
    tm = min(tm, _round_up(n, sublane))
    num_tiles = pl.cdiv(n, tm)

    kernel = functools.partial(_ls_ce_partial_kernel, n_total=n)

    parts = pl.pallas_call(
        kernel,
        out_shape=jax.ShapeDtypeStruct((num_tiles, 1, 128), jnp.float32),
        grid=(num_tiles,),
        in_specs=[
            pl.BlockSpec((tm, c), lambda i: (i, 0)),      # preds row tile
            pl.BlockSpec((tm, 1), lambda i: (i, 0)),      # target row tile
        ],
        out_specs=pl.BlockSpec((1, 1, 128), lambda i: (i, 0, 0)),
        compiler_params=pltpu.CompilerParams(
            dimension_semantics=("parallel",),            # megacore-friendly
            vmem_limit_bytes=vmem_limit,
        ),
    )(preds, tgt2d)

    # Tiny final reduction + epsilon mix outside the kernel (plain JAX).
    loss_sum = jnp.sum(parts[:, 0, 0])
    nll_sum = jnp.sum(parts[:, 0, 1])
    denom = jnp.float32(n) if reduction == 'mean' else jnp.float32(1.0)
    loss = loss_sum / denom
    nll = nll_sum / denom
    return epsilon * (loss / c) + (1.0 - epsilon) * nll


def _reference(preds, target, epsilon=0.1, reduction='mean'):
    # Pure-JAX reference of the PyTorch forward.
    logp = jax.nn.log_softmax(preds.astype(jnp.float32), axis=-1)
    c = preds.shape[-1]
    per_row_loss = -jnp.sum(logp, axis=-1)
    per_row_nll = -jnp.take_along_axis(logp, target[:, None], axis=-1)[:, 0]
    red = jnp.mean if reduction == 'mean' else jnp.sum
    loss = red(per_row_loss)
    nll = red(per_row_nll)
    return epsilon * (loss / c) + (1 - epsilon) * nll


if __name__ == "__main__":
    key = jax.random.PRNGKey(0)
    k1, k2, k3, k4, k5, k6 = jax.random.split(key, 6)

    # Case 1: f32, reduction='mean', N not a multiple of the row tile
    # (exercises the padded-last-tile mask and the multi-tile grid).
    n1, c1 = 20, 32
    preds1 = jax.random.normal(k1, (n1, c1), dtype=jnp.float32)
    tgt1 = jax.random.randint(k2, (n1,), 0, c1, dtype=jnp.int32)
    out1 = label_smoothing_cross_entropy(preds1, tgt1, epsilon=0.1,
                                         reduction='mean', block_rows=8)
    out1 = jax.block_until_ready(out1)
    ref1 = _reference(preds1, tgt1, epsilon=0.1, reduction='mean')
    assert jnp.allclose(out1, ref1, atol=1e-4, rtol=1e-5), (out1, ref1)

    # Case 2: bf16 input kept bf16 in HBM, reduction='sum', user block_rows=8
    # (exercises the defensive round-up to the bf16 sublane multiple of 16).
    n2, c2 = 16, 128
    preds2 = jax.random.normal(k3, (n2, c2), dtype=jnp.float32).astype(jnp.bfloat16)
    tgt2 = jax.random.randint(k4, (n2,), 0, c2, dtype=jnp.int32)
    out2 = label_smoothing_cross_entropy(preds2, tgt2, epsilon=0.1,
                                         reduction='sum', block_rows=8)
    out2 = jax.block_until_ready(out2)
    ref2 = _reference(preds2, tgt2, epsilon=0.1, reduction='sum')
    assert jnp.allclose(out2, ref2, atol=1e-2, rtol=1e-4), (out2, ref2)

    # Case 3: automatic VMEM-budget block sizing (clamped by N and the
    # >=4-tile megacore cap), f32, reduction='mean'.
    n3, c3 = 40, 256
    preds3 = jax.random.normal(k5, (n3, c3), dtype=jnp.float32)
    tgt3 = jax.random.randint(k6, (n3,), 0, c3, dtype=jnp.int32)
    out3 = label_smoothing_cross_entropy(preds3, tgt3, epsilon=0.1,
                                         reduction='mean')
    out3 = jax.block_until_ready(out3)
    ref3 = _reference(preds3, tgt3, epsilon=0.1, reduction='mean')
    assert jnp.allclose(out3, ref3, atol=1e-4, rtol=1e-5), (out3, ref3)

    print("KERNEL_OK")
</pallas_src>

<mosaic_0001>
module attributes {stable_mosaic.version = 11 : i64} {
  func.func @_ls_ce_partial_kernel(%arg0: i32, %arg1: memref<8x32xf32, #tpu.memory_space<vmem>>, %arg2: memref<8x1xi32, #tpu.memory_space<vmem>>, %arg3: memref<1x1x128xf32, #tpu.memory_space<vmem>>) attributes {dimension_semantics = [#tpu.dimension_semantics<parallel>], iteration_bounds = array<i64: 3>, scalar_prefetch = 0 : i64, scratch_operands = 0 : i64, tpu.core_type = #tpu.core_type<tc>, window_params = [{transform_indices = @transform_0, window_bounds = array<i64: 8, 32>}, {transform_indices = @transform_1, window_bounds = array<i64: 8, 1>}, {transform_indices = @transform_2, window_bounds = array<i64: 1, 1, 128>}]} {
    %c0 = arith.constant 0 : index
    %c0_0 = arith.constant 0 : index
    %0 = vector.load %arg1[%c0, %c0_0] : memref<8x32xf32, #tpu.memory_space<vmem>>, vector<8x32xf32>
    %1 = tpu.iota {dimensions = array<i32: 0>} : vector<8x1xi32>
    %c8_i32 = arith.constant 8 : i32
    %2 = arith.muli %arg0, %c8_i32 : i32
    %3 = vector.broadcast %2 : i32 to vector<8x1xi32>
    %4 = arith.addi %1, %3 : vector<8x1xi32>
    %c20_i32 = arith.constant 20 : i32
    %5 = vector.broadcast %c20_i32 : i32 to vector<8x1xi32>
    %6 = arith.cmpi slt, %4, %5 : vector<8x1xi32>
    %cst = arith.constant dense<0xFF800000> : vector<8xf32>
    %7 = vector.multi_reduction <maximumf>, %0, %cst [1] : vector<8x32xf32> to vector<8xf32>
    %8 = vector.shape_cast %7 : vector<8xf32> to vector<8x1xf32>
    %9 = vector.broadcast %8 : vector<8x1xf32> to vector<8x32xf32>
    %10 = arith.subf %0, %9 : vector<8x32xf32>
    %11 = math.exp %10 : vector<8x32xf32>
    %cst_1 = arith.constant dense<0.000000e+00> : vector<8xf32>
    %12 = vector.multi_reduction <add>, %11, %cst_1 [1] : vector<8x32xf32> to vector<8xf32>
    %13 = vector.shape_cast %12 : vector<8xf32> to vector<8x1xf32>
    %14 = math.log %13 : vector<8x1xf32>
    %15 = arith.addf %8, %14 : vector<8x1xf32>
    %cst_2 = arith.constant dense<0.000000e+00> : vector<8xf32>
    %16 = vector.multi_reduction <add>, %0, %cst_2 [1] : vector<8x32xf32> to vector<8xf32>
    %17 = vector.shape_cast %16 : vector<8xf32> to vector<8x1xf32>
    %18 = tpu.iota {dimensions = array<i32: 1>} : vector<8x32xi32>
    %c0_3 = arith.constant 0 : index
    %c0_4 = arith.constant 0 : index
    %19 = vector.load %arg2[%c0_3, %c0_4] : memref<8x1xi32, #tpu.memory_space<vmem>>, vector<8x1xi32>
    %20 = vector.broadcast %19 : vector<8x1xi32> to vector<8x32xi32>
    %21 = arith.cmpi eq, %18, %20 : vector<8x32xi32>
    %cst_5 = arith.constant 0.000000e+00 : f32
    %22 = vector.broadcast %cst_5 : f32 to vector<8x32xf32>
    %23 = arith.select %21, %0, %22 : vector<8x32xi1>, vector<8x32xf32>
    %cst_6 = arith.constant dense<0.000000e+00> : vector<8xf32>
    %24 = vector.multi_reduction <add>, %23, %cst_6 [1] : vector<8x32xf32> to vector<8xf32>
    %25 = vector.shape_cast %24 : vector<8xf32> to vector<8x1xf32>
    %cst_7 = arith.constant 3.200000e+01 : f32
    %26 = vector.broadcast %cst_7 : f32 to vector<8x1xf32>
    %27 = arith.mulf %26, %15 : vector<8x1xf32>
    %28 = arith.subf %27, %17 : vector<8x1xf32>
    %29 = arith.subf %15, %25 : vector<8x1xf32>
    %cst_8 = arith.constant 0.000000e+00 : f32
    %30 = vector.broadcast %cst_8 : f32 to vector<8x1xf32>
    %31 = arith.select %6, %28, %30 : vector<8x1xi1>, vector<8x1xf32>
    %32 = vector.shape_cast %31 : vector<8x1xf32> to vector<1x8x1xf32>
    %cst_9 = arith.constant dense<0.000000e+00> : vector<1xf32>
    %33 = vector.multi_reduction <add>, %32, %cst_9 [1, 2] : vector<1x8x1xf32> to vector<1xf32>
    %34 = vector.shape_cast %33 : vector<1xf32> to vector<1x1x1xf32>
    %35 = vector.extract %34[0, 0, 0] : f32 from vector<1x1x1xf32>
    %cst_10 = arith.constant 0.000000e+00 : f32
    %36 = vector.broadcast %cst_10 : f32 to vector<8x1xf32>
    %37 = arith.select %6, %29, %36 : vector<8x1xi1>, vector<8x1xf32>
    %38 = vector.shape_cast %37 : vector<8x1xf32> to vector<1x8x1xf32>
    %cst_11 = arith.constant dense<0.000000e+00> : vector<1xf32>
    %39 = vector.multi_reduction <add>, %38, %cst_11 [1, 2] : vector<1x8x1xf32> to vector<1xf32>
    %40 = vector.shape_cast %39 : vector<1xf32> to vector<1x1x1xf32>
    %41 = vector.extract %40[0, 0, 0] : f32 from vector<1x1x1xf32>
    %42 = tpu.iota {dimensions = array<i32: 2>} : vector<1x1x128xi32>
    %c0_i32 = arith.constant 0 : i32
    %43 = vector.broadcast %c0_i32 : i32 to vector<1x1x128xi32>
    %44 = arith.cmpi eq, %42, %43 : vector<1x1x128xi32>
    %c1_i32 = arith.constant 1 : i32
    %45 = vector.broadcast %c1_i32 : i32 to vector<1x1x128xi32>
    %46 = arith.cmpi eq, %42, %45 : vector<1x1x128xi32>
    %cst_12 = arith.constant 0.000000e+00 : f32
    %47 = vector.broadcast %41 : f32 to vector<1x1x128xf32>
    %48 = vector.broadcast %cst_12 : f32 to vector<1x1x128xf32>
    %49 = arith.select %46, %47, %48 : vector<1x1x128xi1>, vector<1x1x128xf32>
    %50 = vector.broadcast %35 : f32 to vector<1x1x128xf32>
    %51 = arith.select %44, %50, %49 : vector<1x1x128xi1>, vector<1x1x128xf32>
    %c0_13 = arith.constant 0 : index
    %c0_14 = arith.constant 0 : index
    %c0_15 = arith.constant 0 : index
    %52 = vector.load %arg3[%c0_13, %c0_14, %c0_15] : memref<1x1x128xf32, #tpu.memory_space<vmem>>, vector<1x1x128xf32>
    tpu.vector_store %arg3[%c0_13, %c0_14, %c0_15], %51 {strides = array<i32>} : memref<1x1x128xf32, #tpu.memory_space<vmem>>, vector<1x1x128xf32>,
    return
  }
  func.func @transform_0(%arg0: i32) -> (i32, i32) {
    %c0_i32 = arith.constant 0 : i32
    %c0_i32_0 = arith.constant 0 : i32
    return %arg0, %c0_i32 : i32, i32
  }
  func.func @transform_1(%arg0: i32) -> (i32, i32) {
    %c0_i32 = arith.constant 0 : i32
    %c0_i32_0 = arith.constant 0 : i32
    return %arg0, %c0_i32 : i32, i32
  }
  func.func @transform_2(%arg0: i32) -> (i32, i32, i32) {
    %c0_i32 = arith.constant 0 : i32
    %c0_i32_0 = arith.constant 0 : i32
    %c0_i32_1 = arith.constant 0 : i32
    return %arg0, %c0_i32, %c0_i32_0 : i32, i32, i32
  }
}

</mosaic_0001>

<bundles_post_ra>
// kernel: tpu_custom_call.1
= control target key start
LH: loop header
LB: loop body
LE: loop exit
PB: predicated region body
PF: predicated region fallthrough
CT: control target
= control target key end

     0   :  { %7 = vsyncpa [#allocation3], 0  ;;  %s555_s0 = inlined_call_operand.vmem [shape: f32[20,32], index: 0, kind: input, shape index: {}]   ;;  %s556_s1 = inlined_call_operand.vmem [shape: s32[20,1], index: 1, kind: input, shape index: {}]   ;;  %s557_s2 = inlined_call_operand.hbm [shape: f32[3,1,128], index: 2, kind: output, shape index: {}]  }
   0x1   :  { %9 = vsyncpa [#allocation3 + $0x1], 0  ;;  %s442_s9 = smov 0   ;;  %s444_s10 = smov 0  }
   0x2   :  { %s446_s11 = smov 0   ;;  %s448_s12 = smov 0  }
   0x3 LB: > { %s463_s13 = sadd.s32 4294967295, %s423_s12   ;;  %s302_s14 = sadd.s32 4294967294, %s423_s12   ;;  %s423_s12 = sphi %s448_s12, %s563_s12   ;;  %s419_s11 = sphi %s446_s11, %s562_s11   ;;  %s415_s10 = sphi %s444_s10, %s561_s10   ;;  %s411_s9 = sphi %s442_s9, %s560_s9  }
   0x4   : > { %s467_s15 = sadd.s32 1, %s423_s12   ;;  %s74_s16 = sadd.s32 1, %s419_s11 }
   0x5   : > { %s71_s17 = ssub.s32 %s423_s12, %s467_s15  ;;  %p84_p0 = scmp.ne.s32.totalorder %s419_s11, %s415_s10 }
   0x6   : > { %p72_p1 = scmp.eq.s32.totalorder %s71_s17, 0  ;;  %p85_p2 = scmp.eq.s32.totalorder %s463_s13, 2 }
   0x7   : > { %p90_p3 = scmp.ne.s32.totalorder %s415_s10, %s411_s9  ;;  %p91_p4 = scmp.eq.s32.totalorder %s302_s14, 2 }
   0x8   : > { %s478_s18 = scalar_select %p72_p1, %s419_s11, %s74_s16  }
   0x9   : > { %p480_p5 = por %p85_p2, %p84_p0  ;;  %p484_p6 = por %p91_p4, %p90_p3 }
   0xa   : > { %p305_p7 = scmp.ge.s32.totalorder %s423_s12, 1  ;;  %p123_p8 = scmp.lt.s32.totalorder %s423_s12, 4 }
   0xc   : > { %p124_p9 = pnand %p305_p7, %p123_p8 }
   0xd   : > { %p147_p10 = scmp.lt.s32.totalorder (!%p124_p9), %s463_s13, 2  ;;  %v425_v0 = vmov (!%p124_p9), 0   ;;  %vm162_vm0 = vcmask (!%p124_p9), 261120   ;;  %v156_v7 = vlaneseq (!%p124_p9)  ;;  %s308_s29 = sshll.u32 (!%p124_p9), %s463_s13, 3  ;;  %vm193_vm3 = vcmask (!%p124_p9), 7168  }
   0xe   : > { %127 = sbr.rel (%p124_p9) target bundleno = 573 (0x23d), region = 28  ;;  %356 = vset.pattern.permute.xlu0 (!%p124_p9), %v425_v0  ;;  %v159_v20 = vstv (!%p124_p9), %s308_s29  ;;  %s145_s30 = sand.u32 (!%p124_p9), 1, %s415_s10  }
   0xf   : > { %v499_v8 = vand.u32 (!%p124_p9), 127, %v156_v7  ;;  %v157_v18 = vshrl.u32 (!%p124_p9), %v156_v7, 7  ;;  %s309_s3 = sshll.u32 (!%p124_p9), %s463_s13, 4  ;;  %s146_s5 = scalar_lea.vmem (!%p124_p9), [#allocation2], %s145_s30 }
  0x10   : > { %s235_s6 = sshll.u32 (!%p124_p9), %s146_s5, 4  ;;  %s513_s16 = scalar_lea.hbm (!%p124_p9), %s557_s2, %s309_s3  ;;  %s515_s6 = int_to_ptr.vmem [resolvable:$true] %s235_s6 }
  0x11   : > { %v160_v23 = vadd.s32 (!%p124_p9), %v159_v20, %v157_v18  ;;  %vm216_vm4 = vcmp.eq.s32.totalorder (!%p124_p9), %v499_v8, 1  ;;  %vm215_vm5 = vcmp.eq.s32.totalorder (!%p124_p9), %v499_v8, 0  ;;  %s361_s17 = scalar_lea.vmem (!%p124_p9), %s515_s6, 16 }
  0x12   : > { %p362_p11 = scmp.ne.s32.totalorder (!%p124_p9), %s515_s6, %s361_s17 }
  0x13   : > { %vm161_vm2 = vcmp.lt.s32.totalorder (!%p124_p9), %v160_v23, 20 }
  0x14   : > { %p363_p12 = pnand (!%p124_p9), %p362_p11, %p480_p5 }
  0x15   : > { %s148_s21 = scalar_select %p147_p10, %s463_s13, 2 }
  0x16   : > { %s223_s13 = scalar_lea.sflag [#allocation3], %s145_s30  ;;  %p364_p13 = pneg %p363_p12 }
  0x17   : > { %s306_s22 = sshll.u32 %s148_s21, 3  ;;  %s426_s21 = smov [#allocation2]  }
  0x18   : > { %s150_s25 = scalar_lea.vmem %s555_s0, %s306_s22  ;;  %s154_s28 = scalar_lea.vmem %s556_s1, %s306_s22 }
  0x19   : > { %v155_v1 = vld [vmem:[%s150_s25] sm:$0xff]  ;;  %s365_s22 = sshll.u32 %s426_s21, 4  ;;  %s366_s22 = int_to_ptr.vmem [resolvable:$false] %s365_s22 }
  0x1a   : > { %v163_v2 = vsel %vm162_vm0, %v155_v1, -inf  ;;  %v180_v3 = vld [vmem:[%s154_s28] sm:$0xff]  ;;  %v175_v12 = vsel %vm162_vm0, %v155_v1, 0.0  ;;  %s367_s23 = scalar_lea.vmem %s366_s22, 32  ;;  %p368_p0 = scmp.lt.s32.totalorder %s515_s6, %s366_s22 }
  0x1b   : > { %164 = vmax.xlane.f32.xlu0 %v163_v2  ;;  %p369_p1 = scmp.lt.s32.totalorder %s367_s23, %s361_s17 }
  0x1d   : > { %p370_p2 = por %p369_p1, %p368_p0 }
  0x1f   : > { %p371_p3 = pnand %p370_p2, %p364_p13 }
  0x31   : > { %182 = vperm.xlu0 %356, %v180_v3  }
  0xa8   : > { %v165_v4 = vpop.xlane.xlu0 %164 }
  0xa9   : > { %v166_v5 = vsub.f32 %v155_v1, %v165_v4 }
  0xab   : > { %v167_v6 = vmul.f32 1.442695, %v166_v5 }
  0xad   : > { %357 = vpow2.f32 %v167_v6 }
  0xb0   : > { %v183_v9 = vpop.permute.xlu0 %182 }
  0xb1   : > { %vm184_vm1 = vcmp.eq.s32.totalorder %v499_v8, %v183_v9 }
  0xb2   : > { %v185_v13 = vsel %vm184_vm1, %v155_v1, 0.0 }
  0xb3   : > { %v186_v14 = vsel %vm162_vm0, %v185_v13, 0.0 }
  0xb7   : > { %v358_v10 = vpop.eup %357 }
  0xb8   : > { %v169_v11 = vsel %vm162_vm0, %v358_v10, 0.0 }
  0xb9   : > { %170 = vadd.xlane.f32.xlu1 %v169_v11 }
  0xbd   : > { %176 = vadd.xlane.f32.xlu1 %v175_v12 }
  0xc1   : > { %187 = vadd.xlane.f32.xlu1 %v186_v14 }
 0x146   : > { %v171_v15 = vpop.xlane.xlu1 %170 }
 0x147   : > { %359 = vlog2.f32 %v171_v15 }
 0x14a   : > { %v177_v16 = vpop.xlane.xlu1 %176 }
 0x14e   : > { %v188_v22 = vpop.xlane.xlu1 %187 }
 0x151   : > { %v360_v17 = vpop.eup %359 }
 0x152   : > { %v173_v19 = vmul.f32 0.6931472, %v360_v17 }
 0x154   : > { %v174_v21 = vadd.f32 %v173_v19, %v165_v4 }
 0x156   : > { %v189_v24 = vmul.f32 32.0, %v174_v21  ;;  %v191_v26 = vsub.f32 %v174_v21, %v188_v22 }
 0x158   : > { %v190_v25 = vsub.f32 %v189_v24, %v177_v16  ;;  %v204_v29 = vsel %vm161_vm2, %v191_v26, 0.0 }
 0x159   : > { %v205_v30 = vsel %vm193_vm3, %v204_v29, 0.0 }
 0x15a   : > { %v192_v27 = vsel %vm161_vm2, %v190_v25, 0.0 }
 0x15b   : > { %v194_v28 = vsel %vm193_vm3, %v192_v27, 0.0 }
 0x15c   : > { %195 = vadd.xlane.f32.xlu1 %v194_v28 }
 0x160   : > { %206 = vadd.xlane.f32.xlu1 %v205_v30 }
 0x1e9   : > { %v196_v31 = vpop.xlane.xlu1 %195 }
 0x1ea   : > { %v197_v32 = vrot.slane %v196_v31, 4 }
 0x1ec   : > { %v198_v33 = vadd.f32 %v197_v32, %v196_v31 }
 0x1ed   : > { %v207_v34 = vpop.xlane.xlu1 %206 }
 0x1ee   : > { %v199_v35 = vrot.slane %v198_v33, 2  ;;  %v208_v36 = vrot.slane %v207_v34, 4 }
 0x1f0   : > { %v209_v37 = vadd.f32 %v208_v36, %v207_v34  ;;  %v200_v38 = vadd.f32 %v199_v35, %v198_v33 }
 0x1f2   : > { %v210_v39 = vrot.slane %v209_v37, 2  ;;  %v201_v40 = vrot.slane %v200_v38, 1 }
 0x1f4   : > { %v211_v41 = vadd.f32 %v210_v39, %v209_v37  ;;  %v202_v42 = vadd.f32 %v201_v40, %v200_v38 }
 0x1f6   : > { %312 = vpush %v202_v42  ;;  %v212_v43 = vrot.slane %v211_v41, 1 }
 0x1f8   : > { %v213_v44 = vadd.f32 %v212_v43, %v211_v41 }
 0x1fa   : > { %314 = vpush %v213_v44 }
 0x227   : > { %s313_s4 = spop %312 }
 0x228   : > { %v219_v46 = vstv %s313_s4 }
 0x22b   : > { %s315_s7 = spop %314 }
 0x22c   : > { %v217_v45 = vstv %s315_s7 }
 0x22d   : > { %v218_v47 = vsel %vm216_vm4, %v217_v45, 0.0 }
 0x22e   : > { %v220_v48 = vsel %vm215_vm5, %v219_v46, %v218_v47 }
 0x22f   : > { %221 = vst [vmem:[%s146_s5] sm:$0x1] %v220_v48 }
 0x230   : > { %374 = shalt.err (!%p371_p3)
}
 0x231   : > { %s375_s24 = scalar_lea.hbm %s513_s16, 16  ;;  %s379_s27 = scalar_lea.hbm %s557_s2, 48 }
 0x232   : > { %p376_p4 = scmp.ne.s32.totalorder %s513_s16, %s375_s24  ;;  %p380_p9 = scmp.lt.u32.totalorder %s513_s16, %s557_s2 }
 0x233   : > { %p381_p10 = scmp.lt.u32.totalorder %s379_s27, %s375_s24  ;;  %p383_p12 = scmp.lt.u32.totalorder %s375_s24, %s513_s16 }
 0x234   : > { %p377_p7 = pnand %p376_p4, %p480_p5 }
 0x235   : > { %p382_p11 = por %p381_p10, %p380_p9 }
 0x236   : > { %p378_p8 = pneg %p377_p7 }
 0x237   : > { %p384_p13 = por %p383_p12, %p382_p11 }
 0x239   : > { %p385_p0 = pnand %p384_p13, %p378_p8 }
 0x23b   : > { %388 = shalt.err (!%p385_p0)
}
 0x23c   : > { %316 = dma.vmem_to_hbm [thread:$0]  (%p480_p5), %s515_s6, 16, %s513_s16, %s223_s13  }
 0x23d PF: > { %p322_p1 = scmp.ge.s32.totalorder %s423_s12, 2  ;;  %s247_s30 = sand.u32 1, %s411_s9  }
 0x23e   : > { %s248_s3 = scalar_lea.sflag [#allocation3], %s247_s30 }
 0x23f   : > { %p319_p2 = pnand %p322_p1, %p484_p6 }
 0x241   : > { %406 = dma.done.wait (!%p319_p2), %s248_s3, 16  }
 0x242   : > { %408 = vsyncadd (!%p319_p2), %s248_s3, 4294967280  ;;  %p12_p3 = scmp.ge.s32.totalorder %s467_s15, 5   ;;  %s560_s9 = smov %s415_s10 }
 0x243   : > { %s561_s10 = smov %s419_s11  ;;  %s562_s11 = smov %s478_s18 }
 0x244   : > { %s563_s12 = smov %s467_s15  ;;  %14 = sbr.rel (!%p12_p3) target bundleno = 3 (0x3), region = 66 }
 0x24b   :  { %252 = vsyncpa [#allocation3], 1 }
 0x24c   :  { %254 = vsyncpa [#allocation3 + $0x1], 1 }

</bundles_post_ra>
